<compile_context>
chip_gen: v7x
topology: tpu7x:2x2x1
jax: 0.10.0
libtpu: 0.0.40
codegen_flags: <defaults>
</compile_context>

<pallas_src>
import jax
import jax.numpy as jnp
from jax.experimental import pallas as pl
from jax.experimental.pallas import tpu as pltpu

_LANES = 128
_OUT_PAD = 8          # lane-padded output width (real output is column 0)
_SUBLANE = 16         # bf16 x tiles -> batch tile multiple of 16


def _round_up(n, m):
    return ((n + m - 1) // m) * m


def _cdiv(a, b):
    return -(-a // b)


# ---------------------------------------------------------------------------
# Kernel: 4 MXU matmuls (bf16 operands, f32 accumulate) + VPU add/relu.
# Bias + BN scale already folded into (w_i, t_i); dropout = identity (eval).
# ---------------------------------------------------------------------------
def _mlp_kernel(x_ref,
                w1_ref, t1_ref,
                w2_ref, t2_ref,
                w3_ref, t3_ref,
                w4_ref, b4_ref,
                o_ref):
    x = x_ref[...]  # bf16

    h = jnp.dot(x, w1_ref[...], preferred_element_type=jnp.float32) + t1_ref[...]
    h = jnp.maximum(h, 0.0).astype(jnp.bfloat16)

    h = jnp.dot(h, w2_ref[...], preferred_element_type=jnp.float32) + t2_ref[...]
    h = jnp.maximum(h, 0.0).astype(jnp.bfloat16)

    h = jnp.dot(h, w3_ref[...], preferred_element_type=jnp.float32) + t3_ref[...]
    h = jnp.maximum(h, 0.0).astype(jnp.bfloat16)

    out = jnp.dot(h, w4_ref[...], preferred_element_type=jnp.float32) + b4_ref[...]
    o_ref[...] = out.astype(o_ref.dtype)


# ---------------------------------------------------------------------------
# Wrapper: batch grid, resident (constant-index) weights, narrow (8-lane)
# output writeback.
# ---------------------------------------------------------------------------
def _pick_tile(B, tb):
    """Adaptive batch tile: bound per-tile size by `tb`, balance tile sizes so
    padding waste is small, and keep >=2 grid steps for v7x megacore sharding
    when the batch is big enough to split."""
    n_tiles = max(1, _cdiv(B, tb))
    if n_tiles == 1 and B > 2 * _SUBLANE:
        n_tiles = 2
    return _round_up(_cdiv(B, n_tiles), _SUBLANE)


def auto_nn_forward(x, kparams, *, tb=4096):
    """x: (B, F) float32. Returns (B, 1) float32."""
    B, F = x.shape

    TB = _pick_tile(B, tb)
    Bp = _round_up(B, TB)
    if Bp != B:
        x = jnp.pad(x, ((0, Bp - B), (0, 0)))
    x = x.astype(jnp.bfloat16)
    grid = (Bp // TB,)

    weight_args = (
        kparams["w1"], kparams["t1"],
        kparams["w2"], kparams["t2"],
        kparams["w3"], kparams["t3"],
        kparams["w4"], kparams["b4"],
    )

    # x is the only per-step DMA; weights/shifts use full-array blocks with a
    # constant index_map so they are fetched once and stay resident in VMEM.
    # TODO(synk): on v5e, if xprof still shows exposed input DMA, add
    #             pipeline_mode=pl.Buffered(3) on this x BlockSpec.
    in_specs = [pl.BlockSpec((TB, F), lambda i: (i, 0))]
    in_specs += [pl.BlockSpec(p.shape, lambda i: (0, 0)) for p in weight_args]

    out = pl.pallas_call(
        _mlp_kernel,
        out_shape=jax.ShapeDtypeStruct((Bp, _OUT_PAD), jnp.float32),
        grid=grid,
        in_specs=in_specs,
        out_specs=pl.BlockSpec((TB, _OUT_PAD), lambda i: (i, 0)),
        compiler_params=pltpu.CompilerParams(
            dimension_semantics=("parallel",),      # shard batch over v7x's 2 TCs
            vmem_limit_bytes=32 * 1024 * 1024,      # explicit, safe on v7x's 64 MiB
        ),
    )(x, *weight_args)

    return out[:B, :1]


# ---------------------------------------------------------------------------
# Parameter construction (logical shapes match the PyTorch module) and the
# host-side fold + pad transform feeding the kernel.
# ---------------------------------------------------------------------------
def make_params(input_size, key):
    """Linear weights xavier_uniform, biases zero (as in the module __init__).
    BatchNorm affine/running stats drawn deterministically so the folded
    scale/shift are non-trivial."""
    H1 = max(64, input_size * 2)
    H2 = max(32, input_size)
    H3 = max(16, input_size // 2)
    dims = [(input_size, H1), (H1, H2), (H2, H3), (H3, 1)]
    eps = 1e-5

    params = {}
    keys = jax.random.split(key, 16)
    k_it = iter(keys)
    for i, (fi, fo) in enumerate(dims, start=1):
        bound = (6.0 / (fi + fo)) ** 0.5
        # stored as (in, out) = transpose of PyTorch's (out, in) weight
        params[f"w{i}"] = jax.random.uniform(next(k_it), (fi, fo), jnp.float32,
                                             -bound, bound)
        params[f"b{i}"] = jnp.zeros((1, fo), jnp.float32)
        if i <= 3:  # BatchNorm1d after the first three Linear layers
            gamma = jax.random.uniform(next(k_it), (1, fo), jnp.float32, 0.5, 1.5)
            beta = jax.random.uniform(next(k_it), (1, fo), jnp.float32, -0.5, 0.5)
            mean = jax.random.uniform(next(k_it), (1, fo), jnp.float32, -0.5, 0.5)
            var = jax.random.uniform(next(k_it), (1, fo), jnp.float32, 0.5, 1.5)
            s = gamma / jnp.sqrt(var + eps)
            params[f"s{i}"] = s
            params[f"t{i}"] = beta - mean * s
    return params


def fold_and_pad_params(params, input_size):
    """Fold bias + BN scale/shift into each layer's weights, zero-pad hidden
    widths to 128 lanes and the final output to 8 lanes, and store matmul
    operands (weights) as bf16 while keeping the additive shifts in f32:
        layer_i(x) = relu(x @ (W_i * s_i) + (b_i * s_i + t_i))
    Zero-padded columns stay exactly zero through ReLU and the zero-padded
    rows of the next weight, so the math is unchanged."""
    H1 = max(64, input_size * 2)
    H2 = max(32, input_size)
    H3 = max(16, input_size // 2)
    H1p, H2p, H3p = (_round_up(h, _LANES) for h in (H1, H2, H3))
    in_dims = [input_size, H1, H2, H3]
    in_pad = [input_size, H1p, H2p, H3p]
    out_pad = [H1p, H2p, H3p, _OUT_PAD]

    k = {}
    for i in range(1, 5):
        w = params[f"w{i}"]
        b = params[f"b{i}"]
        if i <= 3:
            s = params[f"s{i}"]
            t = params[f"t{i}"]
            w = w * s                       # scale columns by BN scale
            shift = b * s + t               # folded bias + BN shift
        else:
            shift = b
        pad_rows = in_pad[i - 1] - in_dims[i - 1]
        pad_cols = out_pad[i - 1] - w.shape[1]
        k[f"w{i}"] = jnp.pad(w, ((0, pad_rows), (0, pad_cols))).astype(jnp.bfloat16)
        key_t = f"t{i}" if i <= 3 else "b4"
        k[key_t] = jnp.pad(shift, ((0, 0), (0, pad_cols)))  # f32, added to f32 acc
    return k


def _reference_forward(x, params):
    """Plain-JAX f32 reference (eval-mode semantics) for a sanity check."""
    h = x
    for i in range(1, 4):
        h = h @ params[f"w{i}"] + params[f"b{i}"]
        h = jnp.maximum(h * params[f"s{i}"] + params[f"t{i}"], 0.0)
    return h @ params["w4"] + params["b4"]


if __name__ == "__main__":
    input_size = 32          # -> H1=64, H2=32, H3=16, out=1
    batch = 8

    key = jax.random.PRNGKey(0)
    k_x, k_p = jax.random.split(key)
    x = jax.random.normal(k_x, (batch, input_size), jnp.float32)

    params = make_params(input_size, k_p)
    kparams = fold_and_pad_params(params, input_size)

    out = auto_nn_forward(x, kparams)
    out = jax.block_until_ready(out)

    ref = _reference_forward(x, params)
    assert out.shape == (batch, 1)
    # bf16 matmul operands -> looser tolerance than the pure-f32 version.
    assert jnp.allclose(out, ref, atol=5e-2, rtol=5e-2)

    print("KERNEL_OK")
</pallas_src>

<mosaic_0001>
module attributes {stable_mosaic.version = 11 : i64} {
  func.func @_mlp_kernel(%arg0: i32, %arg1: memref<16x32xbf16, #tpu.memory_space<vmem>>, %arg2: memref<32x128xbf16, #tpu.memory_space<vmem>>, %arg3: memref<1x128xf32, #tpu.memory_space<vmem>>, %arg4: memref<128x128xbf16, #tpu.memory_space<vmem>>, %arg5: memref<1x128xf32, #tpu.memory_space<vmem>>, %arg6: memref<128x128xbf16, #tpu.memory_space<vmem>>, %arg7: memref<1x128xf32, #tpu.memory_space<vmem>>, %arg8: memref<128x8xbf16, #tpu.memory_space<vmem>>, %arg9: memref<1x8xf32, #tpu.memory_space<vmem>>, %arg10: memref<16x8xf32, #tpu.memory_space<vmem>>) attributes {dimension_semantics = [#tpu.dimension_semantics<parallel>], iteration_bounds = array<i64: 1>, scalar_prefetch = 0 : i64, scratch_operands = 0 : i64, tpu.core_type = #tpu.core_type<tc>, window_params = [{transform_indices = @transform_0, window_bounds = array<i64: 16, 32>}, {pipeline_mode = #tpu.pipeline_mode<synchronous>, transform_indices = @transform_1, window_bounds = array<i64: 32, 128>}, {pipeline_mode = #tpu.pipeline_mode<synchronous>, transform_indices = @transform_2, window_bounds = array<i64: 1, 128>}, {pipeline_mode = #tpu.pipeline_mode<synchronous>, transform_indices = @transform_3, window_bounds = array<i64: 128, 128>}, {pipeline_mode = #tpu.pipeline_mode<synchronous>, transform_indices = @transform_4, window_bounds = array<i64: 1, 128>}, {pipeline_mode = #tpu.pipeline_mode<synchronous>, transform_indices = @transform_5, window_bounds = array<i64: 128, 128>}, {pipeline_mode = #tpu.pipeline_mode<synchronous>, transform_indices = @transform_6, window_bounds = array<i64: 1, 128>}, {pipeline_mode = #tpu.pipeline_mode<synchronous>, transform_indices = @transform_7, window_bounds = array<i64: 128, 8>}, {pipeline_mode = #tpu.pipeline_mode<synchronous>, transform_indices = @transform_8, window_bounds = array<i64: 1, 8>}, {transform_indices = @transform_9, window_bounds = array<i64: 16, 8>}]} {
    %c0 = arith.constant 0 : index
    %c0_0 = arith.constant 0 : index
    %0 = vector.load %arg1[%c0, %c0_0] : memref<16x32xbf16, #tpu.memory_space<vmem>>, vector<16x32xbf16>
    %c0_1 = arith.constant 0 : index
    %c0_2 = arith.constant 0 : index
    %1 = vector.load %arg2[%c0_1, %c0_2] : memref<32x128xbf16, #tpu.memory_space<vmem>>, vector<32x128xbf16>
    %cst = arith.constant dense<0.000000e+00> : vector<16x128xf32>
    %2 = tpu.matmul %0, %1, %cst {dimension_numbers = #tpu.dot_dimension_numbers<[1], [0], [0], [1], [0, 0, 1, 1], [], []>} : vector<16x32xbf16>, vector<32x128xbf16>, vector<16x128xf32> -> vector<16x128xf32>
    %c0_3 = arith.constant 0 : index
    %c0_4 = arith.constant 0 : index
    %3 = vector.load %arg3[%c0_3, %c0_4] : memref<1x128xf32, #tpu.memory_space<vmem>>, vector<1x128xf32>
    %4 = vector.broadcast %3 : vector<1x128xf32> to vector<16x128xf32>
    %5 = arith.addf %2, %4 : vector<16x128xf32>
    %cst_5 = arith.constant 0.000000e+00 : f32
    %6 = vector.broadcast %cst_5 : f32 to vector<16x128xf32>
    %7 = arith.maximumf %5, %6 : vector<16x128xf32>
    %8 = arith.truncf %7 : vector<16x128xf32> to vector<16x128xbf16>
    %c0_6 = arith.constant 0 : index
    %c0_7 = arith.constant 0 : index
    %9 = vector.load %arg4[%c0_6, %c0_7] : memref<128x128xbf16, #tpu.memory_space<vmem>>, vector<128x128xbf16>
    %cst_8 = arith.constant dense<0.000000e+00> : vector<16x128xf32>
    %10 = tpu.matmul %8, %9, %cst_8 {dimension_numbers = #tpu.dot_dimension_numbers<[1], [0], [0], [1], [0, 0, 1, 1], [], []>} : vector<16x128xbf16>, vector<128x128xbf16>, vector<16x128xf32> -> vector<16x128xf32>
    %c0_9 = arith.constant 0 : index
    %c0_10 = arith.constant 0 : index
    %11 = vector.load %arg5[%c0_9, %c0_10] : memref<1x128xf32, #tpu.memory_space<vmem>>, vector<1x128xf32>
    %12 = vector.broadcast %11 : vector<1x128xf32> to vector<16x128xf32>
    %13 = arith.addf %10, %12 : vector<16x128xf32>
    %cst_11 = arith.constant 0.000000e+00 : f32
    %14 = vector.broadcast %cst_11 : f32 to vector<16x128xf32>
    %15 = arith.maximumf %13, %14 : vector<16x128xf32>
    %16 = arith.truncf %15 : vector<16x128xf32> to vector<16x128xbf16>
    %c0_12 = arith.constant 0 : index
    %c0_13 = arith.constant 0 : index
    %17 = vector.load %arg6[%c0_12, %c0_13] : memref<128x128xbf16, #tpu.memory_space<vmem>>, vector<128x128xbf16>
    %cst_14 = arith.constant dense<0.000000e+00> : vector<16x128xf32>
    %18 = tpu.matmul %16, %17, %cst_14 {dimension_numbers = #tpu.dot_dimension_numbers<[1], [0], [0], [1], [0, 0, 1, 1], [], []>} : vector<16x128xbf16>, vector<128x128xbf16>, vector<16x128xf32> -> vector<16x128xf32>
    %c0_15 = arith.constant 0 : index
    %c0_16 = arith.constant 0 : index
    %19 = vector.load %arg7[%c0_15, %c0_16] : memref<1x128xf32, #tpu.memory_space<vmem>>, vector<1x128xf32>
    %20 = vector.broadcast %19 : vector<1x128xf32> to vector<16x128xf32>
    %21 = arith.addf %18, %20 : vector<16x128xf32>
    %cst_17 = arith.constant 0.000000e+00 : f32
    %22 = vector.broadcast %cst_17 : f32 to vector<16x128xf32>
    %23 = arith.maximumf %21, %22 : vector<16x128xf32>
    %24 = arith.truncf %23 : vector<16x128xf32> to vector<16x128xbf16>
    %c0_18 = arith.constant 0 : index
    %c0_19 = arith.constant 0 : index
    %25 = vector.load %arg8[%c0_18, %c0_19] : memref<128x8xbf16, #tpu.memory_space<vmem>>, vector<128x8xbf16>
    %cst_20 = arith.constant dense<0.000000e+00> : vector<16x8xf32>
    %26 = tpu.matmul %24, %25, %cst_20 {dimension_numbers = #tpu.dot_dimension_numbers<[1], [0], [0], [1], [0, 0, 1, 1], [], []>} : vector<16x128xbf16>, vector<128x8xbf16>, vector<16x8xf32> -> vector<16x8xf32>
    %c0_21 = arith.constant 0 : index
    %c0_22 = arith.constant 0 : index
    %27 = vector.load %arg9[%c0_21, %c0_22] : memref<1x8xf32, #tpu.memory_space<vmem>>, vector<1x8xf32>
    %28 = vector.broadcast %27 : vector<1x8xf32> to vector<16x8xf32>
    %29 = arith.addf %26, %28 : vector<16x8xf32>
    %c0_23 = arith.constant 0 : index
    %c0_24 = arith.constant 0 : index
    %30 = vector.load %arg10[%c0_23, %c0_24] : memref<16x8xf32, #tpu.memory_space<vmem>>, vector<16x8xf32>
    tpu.vector_store %arg10[%c0_23, %c0_24], %29 {strides = array<i32>} : memref<16x8xf32, #tpu.memory_space<vmem>>, vector<16x8xf32>,
    return
  }
  func.func @transform_0(%arg0: i32) -> (i32, i32) {
    %c0_i32 = arith.constant 0 : i32
    %c0_i32_0 = arith.constant 0 : i32
    return %arg0, %c0_i32 : i32, i32
  }
  func.func @transform_1(%arg0: i32) -> (i32, i32) {
    %c0_i32 = arith.constant 0 : i32
    %c0_i32_0 = arith.constant 0 : i32
    %c0_i32_1 = arith.constant 0 : i32
    return %c0_i32, %c0_i32_0 : i32, i32
  }
  func.func @transform_2(%arg0: i32) -> (i32, i32) {
    %c0_i32 = arith.constant 0 : i32
    %c0_i32_0 = arith.constant 0 : i32
    %c0_i32_1 = arith.constant 0 : i32
    return %c0_i32, %c0_i32_0 : i32, i32
  }
  func.func @transform_3(%arg0: i32) -> (i32, i32) {
    %c0_i32 = arith.constant 0 : i32
    %c0_i32_0 = arith.constant 0 : i32
    %c0_i32_1 = arith.constant 0 : i32
    return %c0_i32, %c0_i32_0 : i32, i32
  }
  func.func @transform_4(%arg0: i32) -> (i32, i32) {
    %c0_i32 = arith.constant 0 : i32
    %c0_i32_0 = arith.constant 0 : i32
    %c0_i32_1 = arith.constant 0 : i32
    return %c0_i32, %c0_i32_0 : i32, i32
  }
  func.func @transform_5(%arg0: i32) -> (i32, i32) {
    %c0_i32 = arith.constant 0 : i32
    %c0_i32_0 = arith.constant 0 : i32
    %c0_i32_1 = arith.constant 0 : i32
    return %c0_i32, %c0_i32_0 : i32, i32
  }
  func.func @transform_6(%arg0: i32) -> (i32, i32) {
    %c0_i32 = arith.constant 0 : i32
    %c0_i32_0 = arith.constant 0 : i32
    %c0_i32_1 = arith.constant 0 : i32
    return %c0_i32, %c0_i32_0 : i32, i32
  }
  func.func @transform_7(%arg0: i32) -> (i32, i32) {
    %c0_i32 = arith.constant 0 : i32
    %c0_i32_0 = arith.constant 0 : i32
    %c0_i32_1 = arith.constant 0 : i32
    return %c0_i32, %c0_i32_0 : i32, i32
  }
  func.func @transform_8(%arg0: i32) -> (i32, i32) {
    %c0_i32 = arith.constant 0 : i32
    %c0_i32_0 = arith.constant 0 : i32
    %c0_i32_1 = arith.constant 0 : i32
    return %c0_i32, %c0_i32_0 : i32, i32
  }
  func.func @transform_9(%arg0: i32) -> (i32, i32) {
    %c0_i32 = arith.constant 0 : i32
    %c0_i32_0 = arith.constant 0 : i32
    return %arg0, %c0_i32 : i32, i32
  }
}

</mosaic_0001>

<bundles_post_ra>
// kernel: tpu_custom_call.1
= control target key start
LH: loop header
LB: loop body
LE: loop exit
PB: predicated region body
PF: predicated region fallthrough
CT: control target
= control target key end

     0   :  { %14 = vsyncpa [#allocation3], 0  ;;  %s884_s0 = inlined_call_operand.vmem [shape: bf16[16,32], index: 0, kind: input, shape index: {}]   ;;  %s885_s1 = inlined_call_operand.hbm [shape: bf16[32,128], index: 1, kind: input, shape index: {}]   ;;  %s886_s2 = inlined_call_operand.vmem [shape: f32[1,128], index: 2, kind: input, shape index: {}]   ;;  %s887_s3 = inlined_call_operand.vmem [shape: bf16[128,128], index: 3, kind: input, shape index: {}]   ;;  %s888_s4 = inlined_call_operand.vmem [shape: f32[1,128], index: 4, kind: input, shape index: {}]   ;;  %s889_s5 = inlined_call_operand.hbm [shape: bf16[128,128], index: 5, kind: input, shape index: {}]   ;;  %s890_s6 = inlined_call_operand.vmem [shape: f32[1,128], index: 6, kind: input, shape index: {}]   ;;  %s891_s7 = inlined_call_operand.vmem [shape: bf16[128,8], index: 7, kind: input, shape index: {}]   ;;  %s892_s8 = inlined_call_operand.vmem [shape: f32[1,8], index: 8, kind: input, shape index: {}]   ;;  %s893_s9 = inlined_call_operand.vmem [shape: f32[16,8], index: 9, kind: output, shape index: {}]  }
   0x1   :  { %15 = vsyncpa [#allocation5], 0  ;;  %s701_s30 = smov [#allocation2]   ;;  %s653_s13 = scalar_lea.hbm %s885_s1, 256 }
   0x2   :  { %s23_s10 = sshll.u32 %s701_s30, 4  ;;  %p654_p0 = scmp.ne.s32.totalorder %s885_s1, %s653_s13  ;;  %s24_s10 = int_to_ptr.vmem [resolvable:$true] %s23_s10 }
   0x3   :  { %p657_p1 = scmp.lt.u32.totalorder %s653_s13, %s885_s1 }
   0x5   :  { %p659_p2 = pnand %p657_p1, %p654_p0 }
   0x7   :  { %662 = shalt.err (!%p659_p2)
}
   0x8   :  { %s663_s18 = scalar_lea.vmem %s24_s10, 256  ;;  %p668_p4 = scmp.lt.s32.totalorder %s24_s10, %s24_s10 }
   0x9   :  { %p664_p3 = scmp.ne.s32.totalorder %s24_s10, %s663_s18  ;;  %p669_p5 = scmp.lt.s32.totalorder %s663_s18, %s663_s18 }
   0xb   :  { %p670_p6 = por %p669_p5, %p668_p4 }
   0xd   :  { %p671_p7 = pnand %p670_p6, %p664_p3 }
   0xf   :  { %674 = shalt.err (!%p671_p7)
}
  0x10   :  { %s702_s19 = smov 64   ;;  %s703_s20 = smov 4  }
  0x11   :  { %29 = dma.hbm_to_vmem [thread:$0]  %s885_s1, 256, %s24_s10, [#allocation3], %s702_s19, %s702_s19, %s703_s20  }
  0x12   :  { %s704_s23 = smov [#allocation4]   ;;  %s675_s27 = scalar_lea.hbm %s889_s5, 1024 }
  0x13   :  { %s41_s24 = sshll.u32 %s704_s23, 4  ;;  %p676_p8 = scmp.ne.s32.totalorder %s889_s5, %s675_s27  ;;  %s42_s24 = int_to_ptr.vmem [resolvable:$true] %s41_s24 }
  0x14   :  { %p679_p9 = scmp.lt.u32.totalorder %s675_s27, %s889_s5 }
  0x16   :  { %p681_p10 = pnand %p679_p9, %p676_p8 }
  0x18   :  { %684 = shalt.err (!%p681_p10)
}
  0x19   :  { %s685_s12 = scalar_lea.vmem %s42_s24, 1024  ;;  %p690_p12 = scmp.lt.s32.totalorder %s42_s24, %s42_s24 }
  0x1a   :  { %p686_p11 = scmp.ne.s32.totalorder %s42_s24, %s685_s12  ;;  %p691_p13 = scmp.lt.s32.totalorder %s685_s12, %s685_s12 }
  0x1c   :  { %p692_p0 = por %p691_p13, %p690_p12 }
  0x1e   :  { %p693_p1 = pnand %p692_p0, %p686_p11 }
  0x20   :  { %696 = shalt.err (!%p693_p1)
}
  0x21   :  { %47 = dma.hbm_to_vmem [thread:$0]  %s889_s5, 1024, %s42_s24, [#allocation5], %s702_s19, %s702_s19, %s703_s20  }
  0x22   :  { %697 = dma.done.wait [#allocation3], 256  }
  0x23   :  { %698 = vsyncadd [#allocation3], 4294967040 }
  0x24   :  { %699 = dma.done.wait [#allocation5], 1024  }
  0x25   :  { %700 = vsyncadd [#allocation5], 4294966272  ;;  %v705_v0 = vmov 0.0   ;;  %vm706_vm0 = vmmov 0   ;;  %v626_v1 = vld [vmem:[#allocation2] sm:$0xff]   ;;  %v627_v2 = vld [vmem:[#allocation2 + $0x8] sm:$0xff]  }
  0x26   :  { %552 = vmatprep.subr.bf16.mxu0 %v705_v0  ;;  %556 = vmatprep.mubr.msk.bf16.mxu0 %vm706_vm0, %v705_v0  ;;  %v629_v3 = vld [vmem:[%s887_s3] sm:$0xff]   ;;  %v630_v5 = vld [vmem:[%s887_s3 + $0x8] sm:$0xff]   ;;  %vm91_vm1 = vcmask 261120   ;;  %v631_v6 = vld [vmem:[%s887_s3 + $0x10] sm:$0xff]   ;;  %vm481_vm2 = vcmask 64512  }
  0x27   :  { %560 = vmatprep.subr.bf16.mxu1 %v705_v0  ;;  %576 = vmatprep.mubr.msk.bf16.mxu1 %vm706_vm0, %v705_v0  ;;  %v628_v4 = vld [vmem:[%s884_s0] sm:$0xff]   ;;  %v632_v7 = vld [vmem:[%s887_s3 + $0x18] sm:$0xff]   ;;  %v634_v9 = vld [vmem:[%s887_s3 + $0x28] sm:$0xff]  }
  0x28   :  { %553 = vmatpush3.bf16.msra.mxu0 %v626_v1  ;;  %561 = vmatpush3.bf16.msra.mxu1 %v629_v3  ;;  %v633_v8 = vld [vmem:[%s887_s3 + $0x20] sm:$0xff]   ;;  %v635_v10 = vld [vmem:[%s887_s3 + $0x30] sm:$0xff]   ;;  %v636_v11 = vld [vmem:[%s887_s3 + $0x38] sm:$0xff]  }
  0x29   :  { %554 = vmatprep.subr.bf16.mxu0 %v705_v0  ;;  %562 = vmatprep.subr.bf16.mxu1 %v705_v0  ;;  %v637_v12 = vld [vmem:[#allocation4] sm:$0xff]   ;;  %v638_v13 = vld [vmem:[#allocation4 + $0x8] sm:$0xff]   ;;  %v639_v14 = vld [vmem:[#allocation4 + $0x10] sm:$0xff]  }
  0x2a   :  { %v640_v15 = vld [vmem:[#allocation4 + $0x18] sm:$0xff]   ;;  %v641_v16 = vld [vmem:[#allocation4 + $0x20] sm:$0xff]   ;;  %v642_v17 = vld [vmem:[#allocation4 + $0x28] sm:$0xff]  }
  0x2b   :  { %v490_v18 = vld [vmem:[%s886_s2] ss:$0 sm:$0xff]  ;;  %v644_v29 = vld [vmem:[#allocation4 + $0x38] sm:$0xff]   ;;  %v647_v32 = vld [vmem:[%s891_s7 + $0x10] sm:$0xff]  }
  0x2c   :  { %555 = vmatpush3.bf16.msra.mxu0 %v627_v2  ;;  %563 = vmatpush3.bf16.msra.mxu1 %v630_v5  ;;  %v643_v28 = vld [vmem:[#allocation4 + $0x30] sm:$0xff]   ;;  %v646_v31 = vld [vmem:[%s891_s7 + $0x8] sm:$0xff]   ;;  %v648_v33 = vld [vmem:[%s891_s7 + $0x18] sm:$0xff]  }
  0x2d   :  { %580 = vmatprep.subr.bf16.mxu0 %v705_v0  ;;  %564 = vmatprep.subr.bf16.mxu1 %v705_v0  ;;  %v645_v30 = vld [vmem:[%s891_s7] sm:$0xff]   ;;  %v650_v35 = vld [vmem:[%s891_s7 + $0x28] sm:$0xff]   ;;  %v651_v46 = vld [vmem:[%s891_s7 + $0x30] sm:$0xff]  }
  0x2e   :  { %v649_v34 = vld [vmem:[%s891_s7 + $0x20] sm:$0xff]   ;;  %v652_v47 = vld [vmem:[%s891_s7 + $0x38] sm:$0xff]  }
  0x2f   :  { %557 = vmatmul.mubr.msk.bf16.vlgmr.msra.gmra.mrb[0].mxu0 %vm91_vm1, %v628_v4  ;;  %v495_v36 = vld [vmem:[%s888_s4] ss:$0 sm:$0xff] }
  0x30   :  { %596 = vmatprep.mubr.msk.bf16.mxu0 %vm706_vm0, %v705_v0  ;;  %565 = vmatpush3.bf16.msra.mxu1 %v631_v6  ;;  %v504_v48 = vld [vmem:[%s890_s6] ss:$0 sm:$0xff] }
  0x31   :  { %566 = vmatprep.subr.bf16.mxu1 %v705_v0  ;;  %581 = vmatpush3.bf16.msra.mxu0 %v637_v12  ;;  %v513_v58 = vld [vmem:[%s892_s8] ss:$0 sm:$0xff] }
  0x32   :  { %582 = vmatprep.subr.bf16.mxu0 %v705_v0 }
  0x34   :  { %567 = vmatpush3.bf16.msra.mxu1 %v632_v7 }
  0x35   :  { %568 = vmatprep.subr.bf16.mxu1 %v705_v0  ;;  %583 = vmatpush3.bf16.msra.mxu0 %v638_v13 }
  0x36   :  { %584 = vmatprep.subr.bf16.mxu0 %v705_v0 }
  0x38   :  { %569 = vmatpush3.bf16.msra.mxu1 %v633_v8 }
  0x39   :  { %570 = vmatprep.subr.bf16.mxu1 %v705_v0  ;;  %585 = vmatpush3.bf16.msra.mxu0 %v639_v14 }
  0x3a   :  { %586 = vmatprep.subr.bf16.mxu0 %v705_v0 }
  0x3c   :  { %571 = vmatpush3.bf16.msra.mxu1 %v634_v9 }
  0x3d   :  { %572 = vmatprep.subr.bf16.mxu1 %v705_v0  ;;  %587 = vmatpush3.bf16.msra.mxu0 %v640_v15 }
  0x3e   :  { %588 = vmatprep.subr.bf16.mxu0 %v705_v0 }
  0x40   :  { %573 = vmatpush3.bf16.msra.mxu1 %v635_v10 }
  0x41   :  { %574 = vmatprep.subr.bf16.mxu1 %v705_v0  ;;  %589 = vmatpush3.bf16.msra.mxu0 %v641_v16 }
  0x42   :  { %590 = vmatprep.subr.bf16.mxu0 %v705_v0 }
  0x44   :  { %575 = vmatpush3.bf16.msra.mxu1 %v636_v11 }
  0x45   :  { %600 = vmatprep.subr.bf16.mxu1 %v705_v0  ;;  %591 = vmatpush3.bf16.msra.mxu0 %v642_v17 }
  0x46   :  { %592 = vmatprep.subr.bf16.mxu0 %v705_v0 }
  0x49   :  { %593 = vmatpush3.bf16.msra.mxu0 %v643_v28 }
  0x4a   :  { %594 = vmatprep.subr.bf16.mxu0 %v705_v0 }
  0x4d   :  { %595 = vmatpush3.bf16.msra.mxu0 %v644_v29 }
 0x102   :  { %v129_v19 = vpop.f32.mrb[0].mxu0 }
 0x103   :  { %v130_v20 = vadd.f32 %v490_v18, %v129_v19  ;;  %v558_v21 = vpop.f32.mrb[1].mxu0 }
 0x104   :  { %v132_v22 = vpop.f32.mrb[2].mxu0 }
 0x105   :  { %v133_v23 = vadd.f32 %v490_v18, %v132_v22  ;;  %v559_v24 = vpop.f32.mrb[3].mxu0  ;;  %v136_v25 = vmax.f32 %v130_v20, 0.0 }
 0x107   :  { %v137_v26 = vmax.f32 %v133_v23, 0.0 }
 0x109   :  { %v138_v27 = vpack.c.bf16 %v137_v26, %v136_v25 }
 0x10b   :  { %577 = vmatmul.mubr.bf16.vlgmr.msra.gmra.mrb[0].mxu1 %v138_v27 }
 0x10c   :  { %616 = vmatprep.mubr.msk.bf16.mxu1 %vm706_vm0, %v705_v0  ;;  %601 = vmatpush3.bf16.msra.mxu1 %v645_v30 }
 0x10d   :  { %602 = vmatprep.subr.bf16.mxu1 %v705_v0 }
 0x110   :  { %603 = vmatpush3.bf16.msra.mxu1 %v646_v31 }
 0x111   :  { %604 = vmatprep.subr.bf16.mxu1 %v705_v0 }
 0x114   :  { %605 = vmatpush3.bf16.msra.mxu1 %v647_v32 }
 0x115   :  { %606 = vmatprep.subr.bf16.mxu1 %v705_v0 }
 0x118   :  { %607 = vmatpush3.bf16.msra.mxu1 %v648_v33 }
 0x119   :  { %608 = vmatprep.subr.bf16.mxu1 %v705_v0 }
 0x11c   :  { %609 = vmatpush3.bf16.msra.mxu1 %v649_v34 }
 0x11d   :  { %610 = vmatprep.subr.bf16.mxu1 %v705_v0 }
 0x120   :  { %611 = vmatpush3.bf16.msra.mxu1 %v650_v35 }
 0x121   :  { %612 = vmatprep.subr.bf16.mxu1 %v705_v0 }
 0x124   :  { %613 = vmatpush3.bf16.msra.mxu1 %v651_v46 }
 0x125   :  { %614 = vmatprep.subr.bf16.mxu1 %v705_v0 }
 0x128   :  { %615 = vmatpush3.bf16.msra.mxu1 %v652_v47 }
 0x1de   :  { %v244_v37 = vpop.f32.mrb[0].mxu1 }
 0x1df   :  { %v245_v38 = vadd.f32 %v495_v36, %v244_v37  ;;  %v578_v39 = vpop.f32.mrb[1].mxu1 }
 0x1e0   :  { %v247_v40 = vpop.f32.mrb[2].mxu1 }
 0x1e1   :  { %v248_v41 = vadd.f32 %v495_v36, %v247_v40  ;;  %v579_v42 = vpop.f32.mrb[3].mxu1  ;;  %v251_v43 = vmax.f32 %v245_v38, 0.0 }
 0x1e3   :  { %v252_v44 = vmax.f32 %v248_v41, 0.0 }
 0x1e5   :  { %v253_v45 = vpack.c.bf16 %v252_v44, %v251_v43 }
 0x1e7   :  { %597 = vmatmul.mubr.bf16.vlgmr.msra.gmra.mrb[4].mxu0 %v253_v45 }
 0x2ba   :  { %v359_v49 = vpop.f32.mrb[4].mxu0 }
 0x2bb   :  { %v360_v50 = vadd.f32 %v504_v48, %v359_v49  ;;  %v598_v51 = vpop.f32.mrb[5].mxu0 }
 0x2bc   :  { %v362_v52 = vpop.f32.mrb[6].mxu0 }
 0x2bd   :  { %v363_v53 = vadd.f32 %v504_v48, %v362_v52  ;;  %v599_v54 = vpop.f32.mrb[7].mxu0  ;;  %v366_v55 = vmax.f32 %v360_v50, 0.0 }
 0x2bf   :  { %v367_v56 = vmax.f32 %v363_v53, 0.0 }
 0x2c1   :  { %v368_v57 = vpack.c.bf16 %v367_v56, %v366_v55 }
 0x2c3   :  { %617 = vmatmul.mubr.bf16.vlgmr.msra.gmra.mrb[4].mxu1 %v368_v57 }
 0x396   :  { %v474_v59 = vpop.f32.mrb[4].mxu1 }
 0x397   :  { %v475_v60 = vadd.f32 %v513_v58, %v474_v59  ;;  %v618_v61 = vpop.f32.mrb[5].mxu1 }
 0x398   :  { %v477_v62 = vpop.f32.mrb[6].mxu1 }
 0x399   :  { %482 = vst.msk [vmem:[%s893_s9] sm:$0xff] %vm481_vm2, %v475_v60  ;;  %v478_v63 = vadd.f32 %v513_v58, %v477_v62  ;;  %v619_v0 = vpop.f32.mrb[7].mxu1 }
 0x39b   :  { %483 = vst.msk [vmem:[%s893_s9 + $0x8] sm:$0xff] %vm481_vm2, %v478_v63 }
 0x39c   :  { %488 = vsyncpa [#allocation3], 1 }
 0x39d   :  { %489 = vsyncpa [#allocation5], 1 }

</bundles_post_ra>
